<compile_context>
chip_gen: v7x
topology: tpu7x:2x2x1
jax: 0.10.0
libtpu: 0.0.40
codegen_flags: <defaults>
</compile_context>

<pallas_src>
import functools
import warnings

import jax
import jax.numpy as jnp
from jax.experimental import pallas as pl
from jax.experimental.pallas import tpu as pltpu


def _mlp_kernel(x_ref, w1_ref, b1_ref, w2_ref, b2_ref, o_ref):
    # x_ref:  (tile_p, pack*C)   input dtype (f32); cast to bf16 in-kernel
    # w1_ref: (pack*C, pack*2C)  bf16 block-diagonal kron(I_pack, W1)
    # b1_ref: (1, pack*2C)       f32  (b1 tiled pack times)
    # w2_ref: (pack*2C, pack*C)  bf16 block-diagonal kron(I_pack, W2)
    # b2_ref: (1, pack*C)        f32
    # o_ref:  (tile_p, pack*C)   out dtype (lane-dense, unmasked stores)
    x = x_ref[...].astype(jnp.bfloat16)                      # free on VPU slack
    h = jnp.dot(x, w1_ref[...], preferred_element_type=jnp.float32)
    h = jnp.maximum(h + b1_ref[...], 0.0)                    # bias + ReLU in f32
    y = jnp.dot(h.astype(jnp.bfloat16), w2_ref[...],
                preferred_element_type=jnp.float32)
    o_ref[...] = (y + b2_ref[...]).astype(o_ref.dtype)


def _round_up(x, m):
    return ((x + m - 1) // m) * m


def _pack_factor(c):
    # Fold `pack` consecutive node rows into one 128-lane-wide packed row.
    return 128 // c if (c < 128 and 128 % c == 0) else 1


def _tensorcores_per_device():
    # Only v7x has 2 TensorCores per device; best-effort sniff, safe fallback.
    try:
        kind = jax.devices()[0].device_kind.lower()
    except Exception:
        return 1
    return 2 if "v7" in kind else 1


def pack_params(params, in_channels):
    """One-time lane-dense packing of the weights (hoisted out of the forward).

    packed_x @ kron(I_pack, W) == row-wise x @ W, so the packed matmuls are
    mathematically identical to the per-node-row Linears.
    """
    pack = _pack_factor(in_channels)
    eye = jnp.eye(pack, dtype=jnp.float32)
    w1 = params["w1"].astype(jnp.float32)
    w2 = params["w2"].astype(jnp.float32)
    return {
        "w1_p": jnp.kron(eye, w1).astype(jnp.bfloat16),
        "w2_p": jnp.kron(eye, w2).astype(jnp.bfloat16),
        "b1_p": jnp.tile(params["b1"].astype(jnp.float32), (1, pack)),
        "b2_p": jnp.tile(params["b2"].astype(jnp.float32), (1, pack)),
    }


@functools.partial(jax.jit, static_argnames=("tile_n", "out_dtype"))
def baseline_gaencoder_forward(x, edge_index, packed_params, *,
                               tile_n=16384, out_dtype=None):
    # edge_index is intentionally ignored (matches the PyTorch forward).
    del edge_index
    n, c_in = x.shape
    pack = _pack_factor(c_in)
    if pack == 1 and c_in < 128:
        warnings.warn("baseline_gaencoder_forward: in_channels does not pack "
                      "evenly into 128 lanes; falling back to a lane-sparse "
                      "layout (correct but slower).")
    w1_p = packed_params["w1_p"]
    b1_p = packed_params["b1_p"]
    w2_p = packed_params["w2_p"]
    b2_p = packed_params["b2_p"]
    hid = w1_p.shape[1] // pack          # 2 * in_channels
    c_out = w2_p.shape[1] // pack        # in_channels
    if out_dtype is None:
        out_dtype = x.dtype
    x_bytes = jnp.dtype(x.dtype).itemsize
    o_bytes = jnp.dtype(out_dtype).itemsize

    # ---- static tiling decisions (all Python ints) -------------------------
    n_pad = _round_up(n, pack)           # pad only to a multiple of pack
    n_p = n_pad // pack                  # packed rows total

    tile_p = max(8, (tile_n // pack) // 8 * 8)      # packed rows per grid step
    # VMEM-budget-aware cap: dominant consumers are the double-buffered x/out
    # blocks plus the whole-block f32 hidden activation (and its bf16 copy).
    per_row = (2 * x_bytes * pack * c_in            # x block, double-buffered
               + 2 * o_bytes * pack * c_out         # out block, double-buffered
               + 4 * pack * hid                     # f32 hidden activation
               + 2 * pack * hid                     # bf16 copy for 2nd matmul
               + 4 * pack * c_out)                  # f32 y before store
    budget = 20 * 1024 * 1024                       # safe on v7x's 64 MiB VMEM
    tile_p = min(tile_p, max(8, (budget // per_row) // 8 * 8))
    tile_p = min(tile_p, _round_up(n_p, 8))
    # v7x only: keep >=2 balanced "parallel" steps so both TCs get work.
    if _tensorcores_per_device() >= 2 and tile_p >= n_p and n_p >= 16:
        tile_p = _round_up((n_p + 1) // 2, 8)
    grid_n = pl.cdiv(n_p, tile_p)        # ragged final block handled by Pallas

    # ---- input packing: pure row-major reshape (free); pad only if needed --
    x_in = x
    if n_pad != n:
        x_in = jnp.pad(x_in, ((0, n_pad - n), (0, 0)))
    x_packed = x_in.reshape(n_p, pack * c_in)       # bit-identical layout

    # ---- cost estimate (advisory) ------------------------------------------
    flops = (2 * n_p * (pack * c_in) * (pack * hid)
             + 2 * n_p * (pack * hid) * (pack * c_out))
    bytes_accessed = (x_bytes * n_p * pack * c_in
                      + o_bytes * n_p * pack * c_out
                      + 2 * (pack * c_in) * (pack * hid)       # w1 (bf16)
                      + 2 * (pack * hid) * (pack * c_out)      # w2 (bf16)
                      + 4 * pack * (hid + c_out))              # biases (f32)
    cost = pl.CostEstimate(flops=flops, transcendentals=0,
                           bytes_accessed=int(bytes_accessed))

    out_packed = pl.pallas_call(
        _mlp_kernel,
        out_shape=jax.ShapeDtypeStruct((n_p, pack * c_out), out_dtype),
        grid_spec=pltpu.PrefetchScalarGridSpec(
            num_scalar_prefetch=0,
            grid=(grid_n,),
            in_specs=[
                pl.BlockSpec((tile_p, pack * c_in), lambda i: (i, 0)),       # x
                pl.BlockSpec((pack * c_in, pack * hid), lambda i: (0, 0)),   # w1
                pl.BlockSpec((1, pack * hid), lambda i: (0, 0)),             # b1
                pl.BlockSpec((pack * hid, pack * c_out), lambda i: (0, 0)),  # w2
                pl.BlockSpec((1, pack * c_out), lambda i: (0, 0)),           # b2
            ],
            out_specs=pl.BlockSpec((tile_p, pack * c_out), lambda i: (i, 0)),
        ),
        compiler_params=pltpu.CompilerParams(
            dimension_semantics=("parallel",),
            vmem_limit_bytes=32 * 1024 * 1024,
        ),
        cost_estimate=cost,
    )(x_packed, w1_p, b1_p, w2_p, b2_p)

    # Unpack: (n_p, pack*c_out) row-major is bit-identical to (n_pad, c_out).
    return out_packed.reshape(n_pad, c_out)[:n]


def init_params(key, in_channels, out_channels, dtype=jnp.float32):
    # Deterministic PyTorch-like init: U(-1/sqrt(fan_in), 1/sqrt(fan_in)).
    assert in_channels == out_channels, "module only type-checks when equal"
    hid = 2 * in_channels
    k1, k2, k3, k4 = jax.random.split(key, 4)
    bound1 = 1.0 / jnp.sqrt(in_channels)
    bound2 = 1.0 / jnp.sqrt(hid)
    # Stored pre-transposed: (in, out) so the kernel does x @ W.
    w1 = jax.random.uniform(k1, (in_channels, hid), dtype, -bound1, bound1)
    b1 = jax.random.uniform(k2, (1, hid), dtype, -bound1, bound1)
    w2 = jax.random.uniform(k3, (hid, in_channels), dtype, -bound2, bound2)
    b2 = jax.random.uniform(k4, (1, in_channels), dtype, -bound2, bound2)
    return {"w1": w1, "b1": b1, "w2": w2, "b2": b2}


if __name__ == "__main__":
    key = jax.random.PRNGKey(0)
    in_channels = out_channels = 32
    # n=515 deliberately not a multiple of pack(=4) or the tile: exercises the
    # pad-to-pack path and the ragged final grid block's partial store.
    n_nodes = 515

    kx, ke, kp = jax.random.split(key, 3)
    x = jax.random.normal(kx, (n_nodes, in_channels), jnp.float32)
    # edge_index (unused by the forward, included for interface fidelity)
    edge_index = jax.random.randint(ke, (2, 1024), 0, n_nodes, jnp.int32)
    params = init_params(kp, in_channels, out_channels)
    packed = pack_params(params, in_channels)   # one-time, outside the hot path

    # Small tile so the small demo still exercises grid_n > 1 + ragged block.
    out = baseline_gaencoder_forward(x, edge_index, packed, tile_n=256)
    out = jax.block_until_ready(out)

    # Reference in plain JAX with the SAME bf16 rounding of x / weights / the
    # hidden activation and full-precision f32 accumulation.
    hp = jax.lax.Precision.HIGHEST
    xb = x.astype(jnp.bfloat16).astype(jnp.float32)
    w1b = params["w1"].astype(jnp.bfloat16).astype(jnp.float32)
    w2b = params["w2"].astype(jnp.bfloat16).astype(jnp.float32)
    h_ref = jnp.maximum(jnp.dot(xb, w1b, precision=hp) + params["b1"], 0.0)
    h_ref = h_ref.astype(jnp.bfloat16).astype(jnp.float32)
    ref = jnp.dot(h_ref, w2b, precision=hp) + params["b2"]

    assert out.shape == (n_nodes, out_channels)
    assert out.dtype == x.dtype
    assert jnp.allclose(out, ref, atol=2e-3, rtol=2e-3), (
        float(jnp.max(jnp.abs(out - ref))))

    print("KERNEL_OK")
</pallas_src>

<mosaic_0001>
module attributes {stable_mosaic.version = 11 : i64} {
  func.func @_mlp_kernel(%arg0: i32, %arg1: memref<64x128xf32, #tpu.memory_space<vmem>>, %arg2: memref<128x256xbf16, #tpu.memory_space<vmem>>, %arg3: memref<1x256xf32, #tpu.memory_space<vmem>>, %arg4: memref<256x128xbf16, #tpu.memory_space<vmem>>, %arg5: memref<1x128xf32, #tpu.memory_space<vmem>>, %arg6: memref<64x128xf32, #tpu.memory_space<vmem>>) attributes {dimension_semantics = [#tpu.dimension_semantics<parallel>], iteration_bounds = array<i64: 3>, scalar_prefetch = 0 : i64, scratch_operands = 0 : i64, tpu.core_type = #tpu.core_type<tc>, window_params = [{transform_indices = @transform_0, window_bounds = array<i64: 64, 128>}, {pipeline_mode = #tpu.pipeline_mode<synchronous>, transform_indices = @transform_1, window_bounds = array<i64: 128, 256>}, {pipeline_mode = #tpu.pipeline_mode<synchronous>, transform_indices = @transform_2, window_bounds = array<i64: 1, 256>}, {pipeline_mode = #tpu.pipeline_mode<synchronous>, transform_indices = @transform_3, window_bounds = array<i64: 256, 128>}, {pipeline_mode = #tpu.pipeline_mode<synchronous>, transform_indices = @transform_4, window_bounds = array<i64: 1, 128>}, {transform_indices = @transform_5, window_bounds = array<i64: 64, 128>}]} {
    %c0 = arith.constant 0 : index
    %c0_0 = arith.constant 0 : index
    %0 = vector.load %arg1[%c0, %c0_0] : memref<64x128xf32, #tpu.memory_space<vmem>>, vector<64x128xf32>
    %1 = arith.truncf %0 : vector<64x128xf32> to vector<64x128xbf16>
    %c0_1 = arith.constant 0 : index
    %c0_2 = arith.constant 0 : index
    %2 = vector.load %arg2[%c0_1, %c0_2] : memref<128x256xbf16, #tpu.memory_space<vmem>>, vector<128x256xbf16>
    %cst = arith.constant dense<0.000000e+00> : vector<64x256xf32>
    %3 = tpu.matmul %1, %2, %cst {dimension_numbers = #tpu.dot_dimension_numbers<[1], [0], [0], [1], [0, 0, 1, 1], [], []>} : vector<64x128xbf16>, vector<128x256xbf16>, vector<64x256xf32> -> vector<64x256xf32>
    %c0_3 = arith.constant 0 : index
    %c0_4 = arith.constant 0 : index
    %4 = vector.load %arg3[%c0_3, %c0_4] : memref<1x256xf32, #tpu.memory_space<vmem>>, vector<1x256xf32>
    %5 = vector.broadcast %4 : vector<1x256xf32> to vector<64x256xf32>
    %6 = arith.addf %3, %5 : vector<64x256xf32>
    %cst_5 = arith.constant 0.000000e+00 : f32
    %7 = vector.broadcast %cst_5 : f32 to vector<64x256xf32>
    %8 = arith.maximumf %6, %7 : vector<64x256xf32>
    %9 = arith.truncf %8 : vector<64x256xf32> to vector<64x256xbf16>
    %c0_6 = arith.constant 0 : index
    %c0_7 = arith.constant 0 : index
    %10 = vector.load %arg4[%c0_6, %c0_7] : memref<256x128xbf16, #tpu.memory_space<vmem>>, vector<256x128xbf16>
    %cst_8 = arith.constant dense<0.000000e+00> : vector<64x128xf32>
    %11 = tpu.matmul %9, %10, %cst_8 {dimension_numbers = #tpu.dot_dimension_numbers<[1], [0], [0], [1], [0, 0, 1, 1], [], []>} : vector<64x256xbf16>, vector<256x128xbf16>, vector<64x128xf32> -> vector<64x128xf32>
    %c0_9 = arith.constant 0 : index
    %c0_10 = arith.constant 0 : index
    %12 = vector.load %arg5[%c0_9, %c0_10] : memref<1x128xf32, #tpu.memory_space<vmem>>, vector<1x128xf32>
    %13 = vector.broadcast %12 : vector<1x128xf32> to vector<64x128xf32>
    %14 = arith.addf %11, %13 : vector<64x128xf32>
    %c0_11 = arith.constant 0 : index
    %c0_12 = arith.constant 0 : index
    %15 = vector.load %arg6[%c0_11, %c0_12] : memref<64x128xf32, #tpu.memory_space<vmem>>, vector<64x128xf32>
    tpu.vector_store %arg6[%c0_11, %c0_12], %14 {strides = array<i32>} : memref<64x128xf32, #tpu.memory_space<vmem>>, vector<64x128xf32>,
    return
  }
  func.func @transform_0(%arg0: i32) -> (i32, i32) {
    %c0_i32 = arith.constant 0 : i32
    %c0_i32_0 = arith.constant 0 : i32
    return %arg0, %c0_i32 : i32, i32
  }
  func.func @transform_1(%arg0: i32) -> (i32, i32) {
    %c0_i32 = arith.constant 0 : i32
    %c0_i32_0 = arith.constant 0 : i32
    %c0_i32_1 = arith.constant 0 : i32
    return %c0_i32, %c0_i32_0 : i32, i32
  }
  func.func @transform_2(%arg0: i32) -> (i32, i32) {
    %c0_i32 = arith.constant 0 : i32
    %c0_i32_0 = arith.constant 0 : i32
    %c0_i32_1 = arith.constant 0 : i32
    return %c0_i32, %c0_i32_0 : i32, i32
  }
  func.func @transform_3(%arg0: i32) -> (i32, i32) {
    %c0_i32 = arith.constant 0 : i32
    %c0_i32_0 = arith.constant 0 : i32
    %c0_i32_1 = arith.constant 0 : i32
    return %c0_i32, %c0_i32_0 : i32, i32
  }
  func.func @transform_4(%arg0: i32) -> (i32, i32) {
    %c0_i32 = arith.constant 0 : i32
    %c0_i32_0 = arith.constant 0 : i32
    %c0_i32_1 = arith.constant 0 : i32
    return %c0_i32, %c0_i32_0 : i32, i32
  }
  func.func @transform_5(%arg0: i32) -> (i32, i32) {
    %c0_i32 = arith.constant 0 : i32
    %c0_i32_0 = arith.constant 0 : i32
    return %arg0, %c0_i32 : i32, i32
  }
}

</mosaic_0001>

<bundles_post_ra>
// kernel: baseline_gaencoder_forward.1
= control target key start
LH: loop header
LB: loop body
LE: loop exit
PB: predicated region body
PF: predicated region fallthrough
CT: control target
= control target key end

     0   :  { %s1263_s18 = smov 0   ;;  %s1265_s19 = smov 0   ;;  %s1488_s0 = inlined_call_operand.vmem [shape: f32[129,128], index: 0, kind: input, shape index: {}]   ;;  %s1489_s1 = inlined_call_operand.vmem [shape: bf16[128,256], index: 1, kind: input, shape index: {}]   ;;  %s1490_s2 = inlined_call_operand.vmem [shape: f32[1,256], index: 2, kind: input, shape index: {}]   ;;  %s1491_s3 = inlined_call_operand.vmem [shape: bf16[256,128], index: 3, kind: input, shape index: {}]   ;;  %s1492_s4 = inlined_call_operand.vmem [shape: f32[1,128], index: 4, kind: input, shape index: {}]   ;;  %s1493_s5 = inlined_call_operand.vmem [shape: f32[129,128], index: 5, kind: output, shape index: {}]  }
   0x1   :  { %s1267_s20 = smov 0  }
   0x2 LB: > { %s1276_s21 = sadd.s32 4294967295, %s1198_s20   ;;  %s1278_s22 = sadd.s32 1, %s1198_s20   ;;  %s1198_s20 = sphi %s1267_s20, %s1500_s20   ;;  %s1194_s19 = sphi %s1265_s19, %s1499_s19   ;;  %s1190_s18 = sphi %s1263_s18, %s1498_s18  }
   0x3   : > { %s129_s23 = ssub.s32 %s1198_s20, %s1278_s22  ;;  %s132_s24 = sadd.s32 1, %s1194_s19 }
   0x4   : > { %p130_p0 = scmp.eq.s32.totalorder %s129_s23, 0  ;;  %p142_p1 = scmp.ne.s32.totalorder %s1194_s19, %s1190_s18 }
   0x5   : > { %p143_p2 = scmp.eq.s32.totalorder %s1276_s21, 2  ;;  %p918_p3 = scmp.ge.s32.totalorder %s1198_s20, 1 }
   0x6   : > { %s1286_s25 = scalar_select %p130_p0, %s1194_s19, %s132_s24  }
   0x7   : > { %p1288_p4 = por %p143_p2, %p142_p1  ;;  %p196_p5 = scmp.lt.s32.totalorder %s1198_s20, 4 }
   0x9   : > { %p197_p6 = pnand %p918_p3, %p196_p5 }
   0xa   : > { %v1104_v0 = vld [vmem:[%s1489_s1 + $0x4] ss:$8 sps:$4 sm:$0xff] (!%p197_p6)   ;;  %v1106_v1 = vld [vmem:[%s1489_s1] ss:$8 sps:$4 sm:$0xff] (!%p197_p6)   ;;  %v1232_v2 = vmov (!%p197_p6), 0   ;;  %s1312_s14 = sshll.u32 (!%p197_p6), %s1276_s21, 3  ;;  %v277_v45 = vlaneseq (!%p197_p6) }
   0xb   : > { %200 = sbr.rel (%p197_p6) target bundleno = 558 (0x22e), region = 40  ;;  %399 = vmatprep.mubr.bf16.mxu0 (!%p197_p6), %v1232_v2  ;;  %367 = vmatprep.subr.bf16.mxu0 (!%p197_p6), %v1104_v0  ;;  %v1107_v3 = vld [vmem:[%s1489_s1 + $0x14] ss:$8 sps:$4 sm:$0xff] (!%p197_p6)   ;;  %v1109_v4 = vld [vmem:[%s1489_s1 + $0x10] ss:$8 sps:$4 sm:$0xff] (!%p197_p6)   ;;  %p232_p7 = scmp.lt.s32.totalorder (!%p197_p6), %s1312_s14, 16 }
   0xc   : > { %368 = vmatpush1.bf16.msra.mxu0 (!%p197_p6), %v1106_v1  ;;  %v1110_v5 = vld [vmem:[%s1489_s1 + $0x24] ss:$8 sps:$4 sm:$0xff] (!%p197_p6)   ;;  %v1112_v6 = vld [vmem:[%s1489_s1 + $0x20] ss:$8 sps:$4 sm:$0xff] (!%p197_p6)   ;;  %v1113_v7 = vld [vmem:[%s1489_s1 + $0x34] ss:$8 sps:$4 sm:$0xff] (!%p197_p6)  }
   0xd   : > { %369 = vmatprep.subr.bf16.mxu0 (!%p197_p6), %v1107_v3  ;;  %v1115_v8 = vld [vmem:[%s1489_s1 + $0x30] ss:$8 sps:$4 sm:$0xff] (!%p197_p6)   ;;  %v1116_v9 = vld [vmem:[%s1489_s1 + $0x44] ss:$8 sps:$4 sm:$0xff] (!%p197_p6)   ;;  %v1118_v10 = vld [vmem:[%s1489_s1 + $0x40] ss:$8 sps:$4 sm:$0xff] (!%p197_p6)  }
   0xe   : > { %v1119_v11 = vld [vmem:[%s1489_s1 + $0x54] ss:$8 sps:$4 sm:$0xff] (!%p197_p6)   ;;  %v1128_v12 = vld [vmem:[%s1491_s3 + $0x40] sm:$0xff] (!%p197_p6)   ;;  %v1130_v14 = vld [vmem:[%s1491_s3 + $0x48] sm:$0xff] (!%p197_p6)   ;;  %v278_v46 = vshrl.u32 (!%p197_p6), %v277_v45, 7  ;;  %s224_s24 = sand.u32 (!%p197_p6), 1, %s1190_s18  }
   0xf   : > { %v1129_v13 = vld [vmem:[%s1491_s3] sm:$0xff] (!%p197_p6)   ;;  %975 = vmatprep.subr.bf16.mxu1 (!%p197_p6), %v1128_v12  ;;  %v1131_v15 = vld [vmem:[%s1491_s3 + $0x8] sm:$0xff] (!%p197_p6)   ;;  %v1132_v16 = vld [vmem:[%s1491_s3 + $0x50] sm:$0xff] (!%p197_p6)   ;;  %s919_s27 = sshll.u32 (!%p197_p6), %s224_s24, 6 }
  0x10   : > { %370 = vmatpush1.bf16.msra.mxu0 (!%p197_p6), %v1109_v4  ;;  %976 = vmatpush3.bf16.msra.mxu1 (!%p197_p6), %v1129_v13  ;;  %v1121_v17 = vld [vmem:[%s1489_s1 + $0x50] ss:$8 sps:$4 sm:$0xff] (!%p197_p6)   ;;  %v1122_v18 = vld [vmem:[%s1489_s1 + $0x64] ss:$8 sps:$4 sm:$0xff] (!%p197_p6)   ;;  %v1124_v19 = vld [vmem:[%s1489_s1 + $0x60] ss:$8 sps:$4 sm:$0xff] (!%p197_p6)  }
  0x11   : > { %371 = vmatprep.subr.bf16.mxu0 (!%p197_p6), %v1110_v5  ;;  %977 = vmatprep.subr.bf16.mxu1 (!%p197_p6), %v1130_v14  ;;  %v1133_v20 = vld [vmem:[%s1491_s3 + $0x10] sm:$0xff] (!%p197_p6)   ;;  %v1134_v21 = vld [vmem:[%s1491_s3 + $0x58] sm:$0xff] (!%p197_p6)   ;;  %v1136_v24 = vld [vmem:[%s1491_s3 + $0x60] sm:$0xff] (!%p197_p6)   ;;  %v279_v47 = vsub.s32 (!%p197_p6), 0, %v278_v46  ;;  %v283_v49 = vsub.s32 (!%p197_p6), 1, %v278_v46  ;;  %s1417_s30 = scalar_lea.vmem (!%p197_p6), [#allocation2], %s919_s27  }
  0x12   : > { %s233_s6 = scalar_select %p232_p7, %s1312_s14, 16  ;;  %v1125_v22 = vld [vmem:[%s1489_s1 + $0x74] ss:$8 sps:$4 sm:$0xff]   ;;  %v1127_v25 = vld [vmem:[%s1489_s1 + $0x70] ss:$8 sps:$4 sm:$0xff]   ;;  %v1137_v28 = vld [vmem:[%s1491_s3 + $0x20] sm:$0xff]  }
  0x13   : > { %v1135_v23 = vld [vmem:[%s1491_s3 + $0x18] sm:$0xff]   ;;  %v1138_v30 = vld [vmem:[%s1491_s3 + $0x68] sm:$0xff]   ;;  %v1140_v41 = vld [vmem:[%s1491_s3 + $0x70] sm:$0xff]   ;;  %s680_s18 = ssub.s32 (%p1288_p4), 17, %s1312_s14 }
  0x14   : > { %372 = vmatpush1.bf16.msra.mxu0 %v1112_v6  ;;  %s921_s16 = sshll.u32 %s233_s6, 3  ;;  %978 = vmatpush3.bf16.msra.mxu1 %v1131_v15  ;;  %v1139_v40 = vld [vmem:[%s1491_s3 + $0x28] sm:$0xff]   ;;  %v1141_v42 = vld [vmem:[%s1491_s3 + $0x30] sm:$0xff]   ;;  %v1142_v43 = vld [vmem:[%s1491_s3 + $0x78] sm:$0xff]   ;;  %s972_s6 = sshll.u32 (%p1288_p4), %s1276_s21, 6 }
  0x15   : > { %373 = vmatprep.subr.bf16.mxu0 %v1113_v7  ;;  %s1361_s10 = scalar_lea.vmem %s1488_s0, %s921_s16  ;;  %979 = vmatprep.subr.bf16.mxu1 %v1132_v16  ;;  %v1143_v44 = vld [vmem:[%s1491_s3 + $0x38] sm:$0xff]   ;;  %v275_v48 = vld [vmem:[%s1490_s2] sm:$0x3]  ;;  %p681_p8 = scmp.lt.s32.totalorder (%p1288_p4), %s680_s18, 8 }
  0x16   : > { %v247_v26 = vld [vmem:[%s1361_s10] sm:$0xff]  ;;  %v248_v27 = vld [vmem:[%s1361_s10 + $0x8] sm:$0xff]  ;;  %v249_v31 = vld [vmem:[%s1361_s10 + $0x10] sm:$0xff]  ;;  %v280_v50 = vrot.slane %v275_v48, %v279_v47  ;;  %v284_v51 = vrot.slane %v275_v48, %v283_v49  ;;  %s1434_s9 = scalar_lea.vmem (%p1288_p4), %s1493_s5, %s972_s6  }
  0x17   : > { %v255_v29 = vpack.c.bf16 %v248_v27, %v247_v26  ;;  %v250_v32 = vld [vmem:[%s1361_s10 + $0x18] sm:$0xff]  ;;  %v251_v34 = vld [vmem:[%s1361_s10 + $0x20] sm:$0xff]  ;;  %v252_v35 = vld [vmem:[%s1361_s10 + $0x28] sm:$0xff] }
  0x18   : > { %374 = vmatpush1.bf16.msra.mxu0 %v1115_v8  ;;  %980 = vmatpush3.bf16.msra.mxu1 %v1133_v20  ;;  %v256_v33 = vpack.c.bf16 %v250_v32, %v249_v31  ;;  %v257_v36 = vpack.c.bf16 %v252_v35, %v251_v34  ;;  %v253_v37 = vld [vmem:[%s1361_s10 + $0x30] sm:$0xff]  ;;  %v254_v38 = vld [vmem:[%s1361_s10 + $0x38] sm:$0xff]  ;;  %v938_v45 = vld [vmem:[%s1492_s4] ss:$0 sm:$0xff] }
  0x19   : > { %375 = vmatprep.subr.bf16.mxu0 %v1116_v9  ;;  %981 = vmatprep.subr.bf16.mxu1 %v1134_v21  ;;  %v258_v39 = vpack.c.bf16 %v254_v38, %v253_v37 }
  0x1c   : > { %376 = vmatpush1.bf16.msra.mxu0 %v1118_v10  ;;  %982 = vmatpush3.bf16.msra.mxu1 %v1135_v23 }
  0x1d   : > { %377 = vmatprep.subr.bf16.mxu0 %v1119_v11  ;;  %983 = vmatprep.subr.bf16.mxu1 %v1136_v24 }
  0x20   : > { %378 = vmatpush1.bf16.msra.mxu0 %v1121_v17  ;;  %984 = vmatpush3.bf16.msra.mxu1 %v1137_v28 }
  0x21   : > { %379 = vmatprep.subr.bf16.mxu0 %v1122_v18  ;;  %985 = vmatprep.subr.bf16.mxu1 %v1138_v30 }
  0x24   : > { %380 = vmatpush1.bf16.msra.mxu0 %v1124_v19  ;;  %986 = vmatpush3.bf16.msra.mxu1 %v1139_v40 }
  0x25   : > { %381 = vmatprep.subr.bf16.mxu0 %v1125_v22  ;;  %987 = vmatprep.subr.bf16.mxu1 %v1140_v41 }
  0x28   : > { %382 = vmatpush1.bf16.msra.mxu0 %v1127_v25  ;;  %988 = vmatpush3.bf16.msra.mxu1 %v1141_v42 }
  0x29   : > { %989 = vmatprep.subr.bf16.mxu1 %v1142_v43 }
  0x2b   : > { %400 = vmatmul.mubr.bf16.vlgmr.msra.gmra.mrb[0].mxu0 %v255_v29 }
  0x2c   : > { %409 = vmatprep.mubr.bf16.mxu0 %v1232_v2  ;;  %990 = vmatpush3.bf16.msra.mxu1 %v1143_v44 }
  0x33   : > { %410 = vmatmul.mubr.bf16.gmra.mrb[4].mxu0 %v256_v33 }
  0x34   : > { %419 = vmatprep.mubr.bf16.mxu0 %v1232_v2 }
  0x3b   : > { %420 = vmatmul.mubr.bf16.gmra.mrb[8].mxu0 %v257_v36 }
  0x3c   : > { %429 = vmatprep.mubr.bf16.mxu0 %v1232_v2 }
  0x43   : > { %430 = vmatmul.mubr.bf16.gmra.mrb[12].mxu0 %v258_v39 }
  0xfe   : > { %v401_v52 = vpop.f32.mrb[0].mxu0 }
  0xff   : > { %v402_v53 = vadd.f32 %v401_v52, %v280_v50  ;;  %v403_v54 = vpop.f32.mrb[1].mxu0 }
 0x100   : > { %v404_v55 = vadd.f32 %v403_v54, %v284_v51  ;;  %v405_v56 = vpop.f32.mrb[2].mxu0 }
 0x101   : > { %v406_v57 = vadd.f32 %v405_v56, %v280_v50  ;;  %v407_v58 = vpop.f32.mrb[3].mxu0  ;;  %v440_v60 = vmax.f32 %v402_v53, 0.0 }
 0x102   : > { %v408_v59 = vadd.f32 %v407_v58, %v284_v51  ;;  %v441_v62 = vmax.f32 %v404_v55, 0.0 }
 0x103   : > { %v442_v61 = vmax.f32 %v406_v57, 0.0 }
 0x104   : > { %v443_v63 = vmax.f32 %v408_v59, 0.0 }
 0x105   : > { %v456_v0 = vpack.c.bf16 %v442_v61, %v440_v60 }
 0x106   : > { %v411_v1 = vpop.f32.mrb[4].mxu0  ;;  %v457_v2 = vpack.c.bf16 %v443_v63, %v441_v62 }
 0x107   : > { %v412_v3 = vadd.f32 %v411_v1, %v280_v50  ;;  %v413_v4 = vpop.f32.mrb[5].mxu0 }
 0x108   : > { %v414_v5 = vadd.f32 %v413_v4, %v284_v51  ;;  %v415_v6 = vpop.f32.mrb[6].mxu0  ;;  %631 = vmatprep.mubr.bf16.mxu1 %v457_v2 }
 0x109   : > { %v416_v7 = vadd.f32 %v415_v6, %v280_v50  ;;  %v417_v8 = vpop.f32.mrb[7].mxu0  ;;  %632 = vmatmul.mubr.bf16.vlgmr.msra.gmra.mrb[0].mxu1 %v456_v0  ;;  %v444_v10 = vmax.f32 %v412_v3, 0.0 }
 0x10a   : > { %v418_v9 = vadd.f32 %v417_v8, %v284_v51  ;;  %v445_v12 = vmax.f32 %v414_v5, 0.0 }
 0x10b   : > { %v446_v11 = vmax.f32 %v416_v7, 0.0 }
 0x10c   : > { %v447_v13 = vmax.f32 %v418_v9, 0.0 }
 0x10d   : > { %v458_v14 = vpack.c.bf16 %v446_v11, %v444_v10 }
 0x10e   : > { %v459_v15 = vpack.c.bf16 %v447_v13, %v445_v12  ;;  %v421_v16 = vpop.f32.mrb[8].mxu0 }
 0x10f   : > { %v422_v17 = vadd.f32 %v421_v16, %v280_v50  ;;  %v423_v18 = vpop.f32.mrb[9].mxu0 }
 0x110   : > { %v424_v19 = vadd.f32 %v423_v18, %v284_v51  ;;  %v425_v20 = vpop.f32.mrb[10].mxu0  ;;  %639 = vmatprep.mubr.bf16.mxu1 %v459_v15 }
 0x111   : > { %v426_v21 = vadd.f32 %v425_v20, %v280_v50  ;;  %v427_v22 = vpop.f32.mrb[11].mxu0  ;;  %640 = vmatmul.mubr.bf16.gmra.mrb[4].mxu1 %v458_v14  ;;  %v448_v24 = vmax.f32 %v422_v17, 0.0 }
 0x112   : > { %v428_v23 = vadd.f32 %v427_v22, %v284_v51  ;;  %v449_v26 = vmax.f32 %v424_v19, 0.0 }
 0x113   : > { %v450_v25 = vmax.f32 %v426_v21, 0.0 }
 0x114   : > { %v451_v27 = vmax.f32 %v428_v23, 0.0 }
 0x115   : > { %v460_v28 = vpack.c.bf16 %v450_v25, %v448_v24 }
 0x116   : > { %v461_v29 = vpack.c.bf16 %v451_v27, %v449_v26  ;;  %v431_v30 = vpop.f32.mrb[12].mxu0 }
 0x117   : > { %v432_v31 = vadd.f32 %v431_v30, %v280_v50  ;;  %v433_v32 = vpop.f32.mrb[13].mxu0 }
 0x118   : > { %v434_v33 = vadd.f32 %v433_v32, %v284_v51  ;;  %v435_v34 = vpop.f32.mrb[14].mxu0  ;;  %647 = vmatprep.mubr.bf16.mxu1 %v461_v29 }
 0x119   : > { %v436_v35 = vadd.f32 %v435_v34, %v280_v50  ;;  %v437_v36 = vpop.f32.mrb[15].mxu0  ;;  %648 = vmatmul.mubr.bf16.gmra.mrb[8].mxu1 %v460_v28  ;;  %v452_v38 = vmax.f32 %v432_v31, 0.0 }
 0x11a   : > { %v438_v37 = vadd.f32 %v437_v36, %v284_v51  ;;  %v453_v40 = vmax.f32 %v434_v33, 0.0 }
 0x11b   : > { %v454_v39 = vmax.f32 %v436_v35, 0.0 }
 0x11c   : > { %v455_v41 = vmax.f32 %v438_v37, 0.0 }
 0x11d   : > { %v462_v42 = vpack.c.bf16 %v454_v39, %v452_v38 }
 0x11e   : > { %v463_v43 = vpack.c.bf16 %v455_v41, %v453_v40 }
 0x120   : > { %655 = vmatprep.mubr.bf16.mxu1 %v463_v43 }
 0x121   : > { %656 = vmatmul.mubr.bf16.gmra.mrb[12].mxu1 %v462_v42 }
 0x1dc   : > { %v991_v44 = vpop.f32.mrb[0].mxu1 }
 0x1dd   : > { %v992_v46 = vpop.f32.mrb[1].mxu1 }
 0x1de   : > { %v993_v47 = vadd.f32 %v992_v46, %v991_v44  ;;  %v994_v48 = vpop.f32.mrb[2].mxu1 }
 0x1df   : > { %v995_v49 = vpop.f32.mrb[3].mxu1 }
 0x1e0   : > { %v634_v50 = vadd.f32 %v993_v47, %v938_v45  ;;  %v996_v51 = vadd.f32 %v995_v49, %v994_v48 }
 0x1e2   : > { %664 = vst [vmem:[%s1417_s30] sm:$0xff] %v634_v50  ;;  %v637_v52 = vadd.f32 %v996_v51, %v938_v45 }
 0x1e4   : > { %665 = vst [vmem:[%s1417_s30 + $0x8] sm:$0xff] %v637_v52  ;;  %v997_v53 = vpop.f32.mrb[4].mxu1 }
 0x1e5   : > { %v998_v54 = vpop.f32.mrb[5].mxu1 }
 0x1e6   : > { %v999_v55 = vadd.f32 %v998_v54, %v997_v53  ;;  %v1000_v56 = vpop.f32.mrb[6].mxu1 }
 0x1e7   : > { %v1001_v57 = vpop.f32.mrb[7].mxu1 }
 0x1e8   : > { %v642_v58 = vadd.f32 %v999_v55, %v938_v45  ;;  %v1002_v59 = vadd.f32 %v1001_v57, %v1000_v56 }
 0x1ea   : > { %666 = vst [vmem:[%s1417_s30 + $0x10] sm:$0xff] %v642_v58  ;;  %v645_v60 = vadd.f32 %v1002_v59, %v938_v45 }
 0x1ec   : > { %667 = vst [vmem:[%s1417_s30 + $0x18] sm:$0xff] %v645_v60  ;;  %v1003_v61 = vpop.f32.mrb[8].mxu1 }
 0x1ed   : > { %v1004_v62 = vpop.f32.mrb[9].mxu1 }
 0x1ee   : > { %v1005_v63 = vadd.f32 %v1004_v62, %v1003_v61  ;;  %v1006_v0 = vpop.f32.mrb[10].mxu1 }
 0x1ef   : > { %v1007_v1 = vpop.f32.mrb[11].mxu1 }
 0x1f0   : > { %v650_v2 = vadd.f32 %v1005_v63, %v938_v45  ;;  %v1008_v3 = vadd.f32 %v1007_v1, %v1006_v0 }
 0x1f2   : > { %668 = vst [vmem:[%s1417_s30 + $0x20] sm:$0xff] %v650_v2  ;;  %v653_v4 = vadd.f32 %v1008_v3, %v938_v45 }
 0x1f4   : > { %669 = vst [vmem:[%s1417_s30 + $0x28] sm:$0xff] %v653_v4  ;;  %v1009_v5 = vpop.f32.mrb[12].mxu1 }
 0x1f5   : > { %v1010_v6 = vpop.f32.mrb[13].mxu1 }
 0x1f6   : > { %v1011_v7 = vadd.f32 %v1010_v6, %v1009_v5  ;;  %v1012_v8 = vpop.f32.mrb[14].mxu1  ;;  %678 = sbr.rel (!%p1288_p4) target bundleno = 558 (0x22e), region = 44 }
 0x1f7   : > { %v1013_v9 = vpop.f32.mrb[15].mxu1 }
 0x1f8   : > { %v658_v10 = vadd.f32 %v1011_v7, %v938_v45  ;;  %v1014_v11 = vadd.f32 %v1013_v9, %v1012_v8 }
 0x1fa   : > { %670 = vst [vmem:[%s1417_s30 + $0x30] sm:$0xff] %v658_v10  ;;  %v661_v12 = vadd.f32 %v1014_v11, %v938_v45 }
 0x1fc   : > { %671 = vst [vmem:[%s1417_s30 + $0x38] sm:$0xff] %v661_v12 }
 0x1fd   : > { %s1502_s18 = smov (!%p681_p8, %s680_s18), 8 }
 0x1fe   : > { %s957_s11 = sshll.u32 %s1502_s18, 7 }
 0x1ff   : > { %p960_p9 = scmp.eq.s32.totalorder %s957_s11, 0 }
 0x200   : > { %s1440_s12 = sshrl.u32 (!%p960_p9), %s1502_s18, 3 }
 0x201   : > { %689 = sbr.rel (%p960_p9) target bundleno = 558 (0x22e), region = 48  ;;  %p961_p10 = scmp.le.s32.totalorder (!%p960_p9), %s1440_s12, 0 }
 0x208   : > { %871 = sbr.rel (%p961_p10) target bundleno = 537 (0x219), region = 124  ;;  %s1495_s21 = smov (!%p961_p10), %s1434_s9 }
 0x209   : > { %s1496_s26 = smov (!%p961_p10), %s1417_s30  ;;  %s1449_s14 = smov (!%p961_p10), 0  }
 0x20a   : > { %s1451_s13 = smov (!%p961_p10), 0  }
 0x20f LB: >> { %v765_v13 = vld [vmem:[%s1206_s26] sm:$0xff]  ;;  %v767_v14 = vld [vmem:[%s1206_s26 + $0x8] sm:$0xff]  ;;  %v769_v15 = vld [vmem:[%s1206_s26 + $0x10] sm:$0xff]  ;;  %s781_s15 = sadd.s32 1, %s1210_s14  ;;  %s759_s13 = sadd.s32 1, %s1214_s13   ;;  %s1214_s13 = sphi %s1451_s13, %s759_s13   ;;  %s1210_s14 = sphi %s1449_s14, %s1497_s14   ;;  %s1206_s26 = sphi %s1496_s26, %s786_s26   ;;  %s1202_s21 = sphi %s1495_s21, %s787_s21  }
 0x210   : >> { %766 = vst [vmem:[%s1202_s21] sm:$0xff] %v765_v13  ;;  %768 = vst [vmem:[%s1202_s21 + $0x8] sm:$0xff] %v767_v14  ;;  %v771_v16 = vld [vmem:[%s1206_s26 + $0x18] sm:$0xff]  ;;  %v773_v17 = vld [vmem:[%s1206_s26 + $0x20] sm:$0xff]  ;;  %p782_p11 = scmp.ge.s32.totalorder %s781_s15, %s1440_s12  ;;  %p758_p12 = scmp.ge.s32.totalorder %s759_s13, %s1440_s12 }
 0x211   : >> { %770 = vst [vmem:[%s1202_s21 + $0x10] sm:$0xff] %v769_v15  ;;  %v775_v18 = vld [vmem:[%s1206_s26 + $0x28] sm:$0xff]  ;;  %772 = vst [vmem:[%s1202_s21 + $0x18] sm:$0xff] %v771_v16  ;;  %v777_v19 = vld [vmem:[%s1206_s26 + $0x30] sm:$0xff] }
 0x212   : >> { %774 = vst [vmem:[%s1202_s21 + $0x20] sm:$0xff] %v773_v17  ;;  %776 = vst [vmem:[%s1202_s21 + $0x28] sm:$0xff] %v775_v18  ;;  %v779_v20 = vld [vmem:[%s1206_s26 + $0x38] sm:$0xff]  ;;  %s1504_s15 = smov (%p782_p11, %s781_s15), 0  ;;  %761 = sbr.rel (!%p758_p12) target bundleno = 527 (0x20f), region = 130 }
 0x213   : >> { %778 = vst [vmem:[%s1202_s21 + $0x30] sm:$0xff] %v777_v19  ;;  %780 = vst [vmem:[%s1202_s21 + $0x38] sm:$0xff] %v779_v20  ;;  %s962_s17 = sshll.u32 %s1504_s15, 6  ;;  %s1497_s14 = smov %s1504_s15 }
 0x214   : >> { %s786_s26 = scalar_lea.vmem %s1417_s30, %s962_s17 [#allocation2]   ;;  %s787_s21 = scalar_lea.vmem %s1434_s9, %s962_s17  }
 0x219 PF: > { %s1470_s10 = sand.u32 7, %s1502_s18   ;;  %s973_s20 = sshll.u32 %s1440_s12, 6 }
 0x21a   : > { %s792_s23 = scalar_lea.vmem %s1417_s30, %s973_s20 [#allocation2]   ;;  %s794_s16 = scalar_lea.vmem %s1434_s9, %s973_s20  }
 0x21b   : > { %p967_p13 = scmp.le.s32.totalorder %s1470_s10, 0 }
 0x21c   : > { %s1216_s24 = smov (!%p967_p13), %s794_s16   ;;  %s1220_s27 = smov (!%p967_p13), %s792_s23  }
 0x21d   : > { %885 = sbr.rel (%p967_p13) target bundleno = 558 (0x22e), region = 135  ;;  %s1224_s28 = smov (!%p967_p13), 0  }
 0x21e   : > { %s1228_s29 = smov (!%p967_p13), 0  }
 0x224 LB: >> { %v804_v21 = vld [vmem:[%s1222_s27] sm:$0xff]  ;;  %s806_s18 = sadd.s32 1, %s1226_s28  ;;  %s798_s29 = sadd.s32 1, %s1230_s29   ;;  %s1230_s29 = sphi %s1228_s29, %s798_s29   ;;  %s1226_s28 = sphi %s1224_s28, %s1225_s28   ;;  %s1222_s27 = sphi %s1220_s27, %s811_s27   ;;  %s1218_s24 = sphi %s1216_s24, %s812_s24  }
 0x225   : >> { %805 = vst [vmem:[%s1218_s24] sm:$0xff] %v804_v21  ;;  %p807_p0 = scmp.ge.s32.totalorder %s806_s18, %s1470_s10  ;;  %p797_p1 = scmp.ge.s32.totalorder %s798_s29, %s1470_s10 }
 0x227   : >> { %s1506_s18 = smov (%p807_p0, %s806_s18), 0  ;;  %800 = sbr.rel (!%p797_p1) target bundleno = 548 (0x224), region = 141 }
 0x228   : >> { %s968_s30 = sshll.u32 %s1506_s18, 3  ;;  %s1225_s28 = smov %s1506_s18  }
 0x229   : >> { %s811_s27 = scalar_lea.vmem %s792_s23, %s968_s30 [#allocation2]   ;;  %s812_s24 = scalar_lea.vmem %s794_s16, %s968_s30  }
 0x22e PF: > { %p12_p2 = scmp.ge.s32.totalorder %s1278_s22, 5   ;;  %s1498_s18 = smov %s1194_s19 }
 0x22f   : > { %s1499_s19 = smov %s1286_s25  ;;  %s1500_s20 = smov %s1278_s22 }
 0x230   :  { %14 = sbr.rel (!%p12_p2) target bundleno = 2 (0x2), region = 152 }

</bundles_post_ra>
